<compile_context>
chip_gen: v7x
topology: tpu7x:2x2x1
jax: 0.10.0
libtpu: 0.0.40
codegen_flags: <defaults>
</compile_context>

<pallas_src>
import functools

import jax
import jax.numpy as jnp
from jax.experimental import pallas as pl
from jax.experimental.pallas import tpu as pltpu

LN_EPS = 1e-5                 # torch.nn.LayerNorm default
_MAX_TOKENS_PER_TILE = 2048   # mem-bound kernels hit ~HBM roofline at >=512 rows


# ---------------------------------------------------------------------------
# Kernels
# ---------------------------------------------------------------------------

def _fused_kernel(x_ref, w_ref, g_ref, b_ref, o_ref):
    """Fused 2x2 gather + LayerNorm(4C) + Linear(4C -> 2C, no bias).

    x_ref: (TM1, 2, W2, 2C)  TM1 row-pairs of the padded image (natural layout)
    w_ref: (2, 2C, D)        permuted + transposed reduction weight (row slabs)
    g_ref: (2, 2C) f32       permuted LayerNorm gamma  (slab a / slab b)
    b_ref: (2, 2C) f32       permuted LayerNorm beta
    o_ref: (TM1*W2, D)
    """
    f32 = jnp.float32
    tm1, _, wcols, c2 = x_ref.shape
    tokens = tm1 * wcols
    inv_c4 = 1.0 / float(2 * c2)

    # slab a = even image rows -> [x0|x2]; slab b = odd image rows -> [x1|x3]
    xa = x_ref[:, 0, :, :].reshape(tokens, c2).astype(f32)
    xb = x_ref[:, 1, :, :].reshape(tokens, c2).astype(f32)

    mean = (jnp.sum(xa, axis=-1, keepdims=True)
            + jnp.sum(xb, axis=-1, keepdims=True)) * inv_c4
    ca = xa - mean
    cb = xb - mean
    var = (jnp.sum(ca * ca, axis=-1, keepdims=True)
           + jnp.sum(cb * cb, axis=-1, keepdims=True)) * inv_c4  # biased, as torch
    inv = jax.lax.rsqrt(var + LN_EPS)

    ya = ca * inv * g_ref[0:1, :] + b_ref[0:1, :]
    yb = cb * inv * g_ref[1:2, :] + b_ref[1:2, :]

    wdt = w_ref.dtype  # activations cast to weight dtype -> bf16 MXU path if w is bf16
    acc = jnp.dot(ya.astype(wdt), w_ref[0], preferred_element_type=f32)
    acc = acc + jnp.dot(yb.astype(wdt), w_ref[1], preferred_element_type=f32)
    o_ref[...] = acc.astype(o_ref.dtype)


def _flat_kernel(x_ref, w_ref, g_ref, b_ref, o_ref):
    """LayerNorm(4C) + Linear on an already-gathered (TM, 4C) token tile."""
    f32 = jnp.float32
    x = x_ref[...].astype(f32)
    mean = jnp.mean(x, axis=-1, keepdims=True)
    c = x - mean
    var = jnp.mean(c * c, axis=-1, keepdims=True)  # biased, as torch
    y = c * jax.lax.rsqrt(var + LN_EPS) * g_ref[...] + b_ref[...]
    o_ref[...] = jnp.dot(y.astype(w_ref.dtype), w_ref[...],
                         preferred_element_type=f32).astype(o_ref.dtype)


# ---------------------------------------------------------------------------
# Parameter prep (one-time; outside the hot path)
# ---------------------------------------------------------------------------

def prepare_patch_merging_params(w_red, gamma, beta, weight_dtype=None):
    """Fold the 2x2-gather channel permutation into the Linear weight and the
    LayerNorm affine params, pre-transpose the weight to (4C, 2C) row-major
    slabs, and pre-cast gamma/beta to f32.

    torch channel order [x0|x1|x2|x3] -> memory-natural order [x0|x2|x1|x3].
    Exact: LayerNorm mean/var are permutation-invariant over channels.
    """
    c4 = gamma.shape[-1]
    c = c4 // 4
    d = w_red.shape[0]
    perm = jnp.array([0, 2, 1, 3], dtype=jnp.int32)
    wt = jnp.transpose(w_red).reshape(4, c, d)        # rows grouped by source pixel
    w2 = wt[perm].reshape(2, 2 * c, d)                # slab a rows, slab b rows
    if weight_dtype is not None:
        w2 = w2.astype(weight_dtype)                  # e.g. bf16 -> bf16 MXU path
    g2 = gamma.reshape(4, c)[perm].reshape(2, 2 * c).astype(jnp.float32)
    b2 = beta.reshape(4, c)[perm].reshape(2, 2 * c).astype(jnp.float32)
    return w2, g2, b2


# ---------------------------------------------------------------------------
# VMEM budgeting / tile selection
# ---------------------------------------------------------------------------

@functools.lru_cache(maxsize=1)
def _vmem_limit_bytes():
    """Explicit scoped-VMEM limit derived from the chip (v7x-safe fallback)."""
    try:
        cap = int(pltpu.get_tpu_info().vmem_capacity_bytes)
    except Exception:
        cap = 64 * 1024 * 1024   # v7x per-TensorCore VMEM; safe everywhere
    return int(cap * 0.70)


def _tile_budget_bytes():
    return int(_vmem_limit_bytes() * 0.8)


def _pick_row_tile(m_row, w2, c2, d, x_item, w_item, budget):
    """Largest row-pair tile (divisor of m_row) fitting the VMEM budget."""
    def est(tm1):
        toks = tm1 * w2
        return (2 * tm1 * 2 * w2 * c2 * x_item   # double-buffered input blocks
                + 2 * toks * d * x_item          # double-buffered output blocks
                + 2 * 2 * c2 * d * w_item        # resident weight (double-buffered)
                + 4 * 2 * c2 * 4                 # gamma / beta (f32)
                + toks * (3 * c2 + d) * 4)       # in-kernel f32 temporaries
    cap = min(m_row, max(1, _MAX_TOKENS_PER_TILE // max(w2, 1)))
    if m_row >= 2:
        cap = min(cap, max(1, m_row // 2))       # keep >= 2 grid steps (megacore)
    for tm1 in range(cap, 0, -1):
        if m_row % tm1 == 0 and est(tm1) <= budget:
            return tm1
    return 1


def _pick_flat_tile(m, c4, d, x_item, w_item, budget):
    """Largest sublane-aligned token tile (divisor of m) fitting the budget."""
    def est(tm):
        return (2 * tm * c4 * x_item + 2 * tm * d * x_item
                + 2 * c4 * d * w_item + 4 * c4 * 4
                + tm * (c4 + d) * 4)
    cap = min(m, _MAX_TOKENS_PER_TILE)
    if m >= 16:
        cap = min(cap, m // 2)                   # keep >= 2 grid steps
    cap -= cap % 8
    for tm in range(cap, 0, -8):
        if m % tm == 0 and est(tm) <= budget:
            return tm
    return m   # full-extent block; only hit for tiny / awkward M


# ---------------------------------------------------------------------------
# Forward
# ---------------------------------------------------------------------------

@functools.partial(jax.jit, static_argnames=("H", "W"))
def patch_merging(x, H, W, w2, g2, b2):
    """x: (B, H*W, C); (w2, g2, b2) from prepare_patch_merging_params.
    Returns (B, ceil(H/2)*ceil(W/2), 2C)."""
    B, L, C = x.shape
    assert L == H * W, "input feature has wrong size"
    C2, C4 = 2 * C, 4 * C
    D = w2.shape[-1]

    xv = x.reshape(B, H, W, C)
    if (H % 2 == 1) or (W % 2 == 1):
        xv = jnp.pad(xv, ((0, 0), (0, H % 2), (0, W % 2), (0, 0)))
    Hp, Wp = xv.shape[1], xv.shape[2]
    H2, W2 = Hp // 2, Wp // 2
    M = B * H2 * W2

    x_item = xv.dtype.itemsize
    w_item = w2.dtype.itemsize
    budget = _tile_budget_bytes()
    vmem_limit = _vmem_limit_bytes()

    if W2 % 8 == 0:
        # Fused-gather path: DMA straight out of the free reshaped image layout.
        Mrow = B * H2
        x4 = xv.reshape(Mrow, 2, W2, C2)          # free, contiguous reshape
        tm1 = _pick_row_tile(Mrow, W2, C2, D, x_item, w_item, budget)
        tokens = tm1 * W2
        out2d = pl.pallas_call(
            _fused_kernel,
            out_shape=jax.ShapeDtypeStruct((M, D), x.dtype),
            grid_spec=pltpu.PrefetchScalarGridSpec(
                num_scalar_prefetch=0,
                grid=(Mrow // tm1,),
                in_specs=[
                    pl.BlockSpec((tm1, 2, W2, C2), lambda i: (i, 0, 0, 0)),
                    pl.BlockSpec((2, C2, D), lambda i: (0, 0, 0)),
                    pl.BlockSpec((2, C2), lambda i: (0, 0)),
                    pl.BlockSpec((2, C2), lambda i: (0, 0)),
                ],
                out_specs=pl.BlockSpec((tokens, D), lambda i: (i, 0)),
            ),
            compiler_params=pltpu.CompilerParams(
                dimension_semantics=("parallel",),
                vmem_limit_bytes=vmem_limit,
            ),
        )(x4, w2, g2, b2)
    else:
        # TODO(synk): for W/2 not a multiple of 8 (sublane) the 2x2 gather stays
        # in XLA (concat below) feeding the same LN+matmul kernel; the fused DMA
        # path above covers all sublane-aligned shapes.
        x0 = xv[:, 0::2, 0::2, :]
        x1 = xv[:, 1::2, 0::2, :]
        x2s = xv[:, 0::2, 1::2, :]
        x3 = xv[:, 1::2, 1::2, :]
        # Natural [x0|x2|x1|x3] order so the same permuted params apply.
        xc = jnp.concatenate([x0, x2s, x1, x3], axis=-1).reshape(M, C4)
        tm = _pick_flat_tile(M, C4, D, x_item, w_item, budget)
        out2d = pl.pallas_call(
            _flat_kernel,
            out_shape=jax.ShapeDtypeStruct((M, D), x.dtype),
            grid_spec=pltpu.PrefetchScalarGridSpec(
                num_scalar_prefetch=0,
                grid=(M // tm,),
                in_specs=[
                    pl.BlockSpec((tm, C4), lambda i: (i, 0)),
                    pl.BlockSpec((C4, D), lambda i: (0, 0)),
                    pl.BlockSpec((1, C4), lambda i: (0, 0)),
                    pl.BlockSpec((1, C4), lambda i: (0, 0)),
                ],
                out_specs=pl.BlockSpec((tm, D), lambda i: (i, 0)),
            ),
            compiler_params=pltpu.CompilerParams(
                dimension_semantics=("parallel",),
                vmem_limit_bytes=vmem_limit,
            ),
        )(xc, w2.reshape(C4, D), g2.reshape(1, C4), b2.reshape(1, C4))

    return out2d.reshape(B, H2 * W2, D)


# ---------------------------------------------------------------------------
# Pure-JAX reference (matches the PyTorch forward exactly)
# ---------------------------------------------------------------------------

def _reference(x, H, W, w_red, gamma, beta):
    B, L, C = x.shape
    xv = x.reshape(B, H, W, C)
    if (H % 2 == 1) or (W % 2 == 1):
        xv = jnp.pad(xv, ((0, 0), (0, H % 2), (0, W % 2), (0, 0)))
    x0 = xv[:, 0::2, 0::2, :]
    x1 = xv[:, 1::2, 0::2, :]
    x2 = xv[:, 0::2, 1::2, :]
    x3 = xv[:, 1::2, 1::2, :]
    xc = jnp.concatenate([x0, x1, x2, x3], axis=-1).reshape(B, -1, 4 * C)
    mean = jnp.mean(xc, axis=-1, keepdims=True)
    var = jnp.mean((xc - mean) ** 2, axis=-1, keepdims=True)
    y = (xc - mean) / jnp.sqrt(var + LN_EPS) * gamma + beta
    return y @ w_red.T


if __name__ == "__main__":
    key = jax.random.PRNGKey(0)
    B, C, H, W = 2, 4, 16, 16
    k1, k2, k3 = jax.random.split(key, 3)

    x = jax.random.normal(k1, (B, H * W, C), dtype=jnp.float32)
    # Deterministic synthetic parameters (torch layout: Linear(4C->2C).weight is (2C, 4C)).
    w_red = jax.random.normal(k2, (2 * C, 4 * C), dtype=jnp.float32) * 0.05
    gamma = 1.0 + 0.01 * jnp.arange(4 * C, dtype=jnp.float32)
    beta = 0.01 * jnp.arange(4 * C, dtype=jnp.float32)

    # One-time parameter prep (permute/transpose weight, f32 gamma/beta).
    w2, g2, b2 = prepare_patch_merging_params(w_red, gamma, beta)

    # Even spatial size -> fused-gather path.
    out = jax.block_until_ready(patch_merging(x, H, W, w2, g2, b2))
    ref = _reference(x, H, W, w_red, gamma, beta)
    assert out.shape == (B, (H // 2) * (W // 2), 2 * C), out.shape
    assert jnp.allclose(out, ref, atol=1e-4, rtol=1e-4), float(jnp.max(jnp.abs(out - ref)))

    # Odd spatial size -> exercises padding + fallback path.
    Ho = Wo = 7
    xo = jax.random.normal(k3, (B, Ho * Wo, C), dtype=jnp.float32)
    out_o = jax.block_until_ready(patch_merging(xo, Ho, Wo, w2, g2, b2))
    ref_o = _reference(xo, Ho, Wo, w_red, gamma, beta)
    assert out_o.shape == (B, 4 * 4, 2 * C), out_o.shape
    assert jnp.allclose(out_o, ref_o, atol=1e-4, rtol=1e-4), float(jnp.max(jnp.abs(out_o - ref_o)))

    print("KERNEL_OK")
</pallas_src>

<mosaic_0001>
module attributes {stable_mosaic.version = 11 : i64} {
  func.func @_fused_kernel(%arg0: i32, %arg1: memref<8x2x8x8xf32, #tpu.memory_space<vmem>>, %arg2: memref<2x8x8xf32, #tpu.memory_space<vmem>>, %arg3: memref<2x8xf32, #tpu.memory_space<vmem>>, %arg4: memref<2x8xf32, #tpu.memory_space<vmem>>, %arg5: memref<64x8xf32, #tpu.memory_space<vmem>>) attributes {dimension_semantics = [#tpu.dimension_semantics<parallel>], iteration_bounds = array<i64: 2>, scalar_prefetch = 0 : i64, scratch_operands = 0 : i64, tpu.core_type = #tpu.core_type<tc>, window_params = [{transform_indices = @transform_0, window_bounds = array<i64: 8, 2, 8, 8>}, {pipeline_mode = #tpu.pipeline_mode<synchronous>, transform_indices = @transform_1, window_bounds = array<i64: 2, 8, 8>}, {pipeline_mode = #tpu.pipeline_mode<synchronous>, transform_indices = @transform_2, window_bounds = array<i64: 2, 8>}, {pipeline_mode = #tpu.pipeline_mode<synchronous>, transform_indices = @transform_3, window_bounds = array<i64: 2, 8>}, {transform_indices = @transform_4, window_bounds = array<i64: 64, 8>}]} {
    %c0 = arith.constant 0 : index
    %c0_0 = arith.constant 0 : index
    %c0_1 = arith.constant 0 : index
    %c0_2 = arith.constant 0 : index
    %0 = vector.load %arg1[%c0, %c0_0, %c0_1, %c0_2] : memref<8x2x8x8xf32, #tpu.memory_space<vmem>>, vector<8x1x8x8xf32>
    %1 = vector.shape_cast %0 : vector<8x1x8x8xf32> to vector<8x8x8xf32>
    %2 = vector.shape_cast %1 : vector<8x8x8xf32> to vector<64x8xf32>
    %c0_3 = arith.constant 0 : index
    %c1 = arith.constant 1 : index
    %c0_4 = arith.constant 0 : index
    %c0_5 = arith.constant 0 : index
    %3 = vector.load %arg1[%c0_3, %c1, %c0_4, %c0_5] : memref<8x2x8x8xf32, #tpu.memory_space<vmem>>, vector<8x1x8x8xf32>
    %4 = vector.shape_cast %3 : vector<8x1x8x8xf32> to vector<8x8x8xf32>
    %5 = vector.shape_cast %4 : vector<8x8x8xf32> to vector<64x8xf32>
    %cst = arith.constant dense<0.000000e+00> : vector<64xf32>
    %6 = vector.multi_reduction <add>, %2, %cst [1] : vector<64x8xf32> to vector<64xf32>
    %7 = vector.shape_cast %6 : vector<64xf32> to vector<64x1xf32>
    %cst_6 = arith.constant dense<0.000000e+00> : vector<64xf32>
    %8 = vector.multi_reduction <add>, %5, %cst_6 [1] : vector<64x8xf32> to vector<64xf32>
    %9 = vector.shape_cast %8 : vector<64xf32> to vector<64x1xf32>
    %10 = arith.addf %7, %9 : vector<64x1xf32>
    %cst_7 = arith.constant 6.250000e-02 : f32
    %11 = vector.broadcast %cst_7 : f32 to vector<64x1xf32>
    %12 = arith.mulf %10, %11 : vector<64x1xf32>
    %13 = vector.broadcast %12 : vector<64x1xf32> to vector<64x8xf32>
    %14 = arith.subf %2, %13 : vector<64x8xf32>
    %15 = vector.broadcast %12 : vector<64x1xf32> to vector<64x8xf32>
    %16 = arith.subf %5, %15 : vector<64x8xf32>
    %17 = arith.mulf %14, %14 : vector<64x8xf32>
    %cst_8 = arith.constant dense<0.000000e+00> : vector<64xf32>
    %18 = vector.multi_reduction <add>, %17, %cst_8 [1] : vector<64x8xf32> to vector<64xf32>
    %19 = vector.shape_cast %18 : vector<64xf32> to vector<64x1xf32>
    %20 = arith.mulf %16, %16 : vector<64x8xf32>
    %cst_9 = arith.constant dense<0.000000e+00> : vector<64xf32>
    %21 = vector.multi_reduction <add>, %20, %cst_9 [1] : vector<64x8xf32> to vector<64xf32>
    %22 = vector.shape_cast %21 : vector<64xf32> to vector<64x1xf32>
    %23 = arith.addf %19, %22 : vector<64x1xf32>
    %cst_10 = arith.constant 6.250000e-02 : f32
    %24 = vector.broadcast %cst_10 : f32 to vector<64x1xf32>
    %25 = arith.mulf %23, %24 : vector<64x1xf32>
    %cst_11 = arith.constant 9.99999974E-6 : f32
    %26 = vector.broadcast %cst_11 : f32 to vector<64x1xf32>
    %27 = arith.addf %25, %26 : vector<64x1xf32>
    %28 = math.rsqrt %27 : vector<64x1xf32>
    %29 = vector.broadcast %28 : vector<64x1xf32> to vector<64x8xf32>
    %30 = arith.mulf %14, %29 : vector<64x8xf32>
    %c0_12 = arith.constant 0 : index
    %c0_13 = arith.constant 0 : index
    %31 = vector.load %arg3[%c0_12, %c0_13] : memref<2x8xf32, #tpu.memory_space<vmem>>, vector<1x8xf32>
    %32 = vector.broadcast %31 : vector<1x8xf32> to vector<64x8xf32>
    %33 = arith.mulf %30, %32 : vector<64x8xf32>
    %c0_14 = arith.constant 0 : index
    %c0_15 = arith.constant 0 : index
    %34 = vector.load %arg4[%c0_14, %c0_15] : memref<2x8xf32, #tpu.memory_space<vmem>>, vector<1x8xf32>
    %35 = vector.broadcast %34 : vector<1x8xf32> to vector<64x8xf32>
    %36 = arith.addf %33, %35 : vector<64x8xf32>
    %37 = vector.broadcast %28 : vector<64x1xf32> to vector<64x8xf32>
    %38 = arith.mulf %16, %37 : vector<64x8xf32>
    %c1_16 = arith.constant 1 : index
    %c0_17 = arith.constant 0 : index
    %39 = vector.load %arg3[%c1_16, %c0_17] : memref<2x8xf32, #tpu.memory_space<vmem>>, vector<1x8xf32>
    %40 = vector.broadcast %39 : vector<1x8xf32> to vector<64x8xf32>
    %41 = arith.mulf %38, %40 : vector<64x8xf32>
    %c1_18 = arith.constant 1 : index
    %c0_19 = arith.constant 0 : index
    %42 = vector.load %arg4[%c1_18, %c0_19] : memref<2x8xf32, #tpu.memory_space<vmem>>, vector<1x8xf32>
    %43 = vector.broadcast %42 : vector<1x8xf32> to vector<64x8xf32>
    %44 = arith.addf %41, %43 : vector<64x8xf32>
    %c0_20 = arith.constant 0 : index
    %c0_21 = arith.constant 0 : index
    %c0_22 = arith.constant 0 : index
    %45 = vector.load %arg2[%c0_20, %c0_21, %c0_22] : memref<2x8x8xf32, #tpu.memory_space<vmem>>, vector<1x8x8xf32>
    %46 = vector.shape_cast %45 : vector<1x8x8xf32> to vector<8x8xf32>
    %cst_23 = arith.constant dense<0.000000e+00> : vector<64x8xf32>
    %47 = tpu.matmul %36, %46, %cst_23 {dimension_numbers = #tpu.dot_dimension_numbers<[1], [0], [0], [1], [0, 0, 1, 1], [], []>} : vector<64x8xf32>, vector<8x8xf32>, vector<64x8xf32> -> vector<64x8xf32>
    %c1_24 = arith.constant 1 : index
    %c0_25 = arith.constant 0 : index
    %c0_26 = arith.constant 0 : index
    %48 = vector.load %arg2[%c1_24, %c0_25, %c0_26] : memref<2x8x8xf32, #tpu.memory_space<vmem>>, vector<1x8x8xf32>
    %49 = vector.shape_cast %48 : vector<1x8x8xf32> to vector<8x8xf32>
    %cst_27 = arith.constant dense<0.000000e+00> : vector<64x8xf32>
    %50 = tpu.matmul %44, %49, %cst_27 {dimension_numbers = #tpu.dot_dimension_numbers<[1], [0], [0], [1], [0, 0, 1, 1], [], []>} : vector<64x8xf32>, vector<8x8xf32>, vector<64x8xf32> -> vector<64x8xf32>
    %51 = arith.addf %47, %50 : vector<64x8xf32>
    %c0_28 = arith.constant 0 : index
    %c0_29 = arith.constant 0 : index
    %52 = vector.load %arg5[%c0_28, %c0_29] : memref<64x8xf32, #tpu.memory_space<vmem>>, vector<64x8xf32>
    tpu.vector_store %arg5[%c0_28, %c0_29], %51 {strides = array<i32>} : memref<64x8xf32, #tpu.memory_space<vmem>>, vector<64x8xf32>,
    return
  }
  func.func @transform_0(%arg0: i32) -> (i32, i32, i32, i32) {
    %c0_i32 = arith.constant 0 : i32
    %c0_i32_0 = arith.constant 0 : i32
    %c0_i32_1 = arith.constant 0 : i32
    %c0_i32_2 = arith.constant 0 : i32
    return %arg0, %c0_i32, %c0_i32_0, %c0_i32_1 : i32, i32, i32, i32
  }
  func.func @transform_1(%arg0: i32) -> (i32, i32, i32) {
    %c0_i32 = arith.constant 0 : i32
    %c0_i32_0 = arith.constant 0 : i32
    %c0_i32_1 = arith.constant 0 : i32
    %c0_i32_2 = arith.constant 0 : i32
    return %c0_i32, %c0_i32_0, %c0_i32_1 : i32, i32, i32
  }
  func.func @transform_2(%arg0: i32) -> (i32, i32) {
    %c0_i32 = arith.constant 0 : i32
    %c0_i32_0 = arith.constant 0 : i32
    %c0_i32_1 = arith.constant 0 : i32
    return %c0_i32, %c0_i32_0 : i32, i32
  }
  func.func @transform_3(%arg0: i32) -> (i32, i32) {
    %c0_i32 = arith.constant 0 : i32
    %c0_i32_0 = arith.constant 0 : i32
    %c0_i32_1 = arith.constant 0 : i32
    return %c0_i32, %c0_i32_0 : i32, i32
  }
  func.func @transform_4(%arg0: i32) -> (i32, i32) {
    %c0_i32 = arith.constant 0 : i32
    %c0_i32_0 = arith.constant 0 : i32
    return %arg0, %c0_i32 : i32, i32
  }
}

</mosaic_0001>

<bundles_post_ra>
// kernel: patch_merging.1
= control target key start
LH: loop header
LB: loop body
LE: loop exit
PB: predicated region body
PF: predicated region fallthrough
CT: control target
= control target key end

     0   :  { %s944_s15 = smov 0   ;;  %s1231_s0 = inlined_call_operand.vmem [shape: f32[16,2,8,8], index: 0, kind: input, shape index: {}]   ;;  %s1232_s1 = inlined_call_operand.vmem [shape: f32[2,8,8], index: 1, kind: input, shape index: {}]   ;;  %s1233_s2 = inlined_call_operand.vmem [shape: f32[2,8], index: 2, kind: input, shape index: {}]   ;;  %s1234_s3 = inlined_call_operand.vmem [shape: f32[2,8], index: 3, kind: input, shape index: {}]   ;;  %s1235_s4 = inlined_call_operand.vmem [shape: f32[128,8], index: 4, kind: output, shape index: {}]  }
   0x1 LB: > { %s791_s16 = sadd.s32 4294967295, %s917_s15   ;;  %p795_p0 = scmp.ge.s32.totalorder %s917_s15, 1  ;;  %s917_s15 = sphi %s944_s15, %s14_s15  }
   0x2   : > { %p164_p1 = scmp.lt.s32.totalorder %s917_s15, 3 }
   0x4   : > { %p165_p2 = pnand %p795_p0, %p164_p1 }
   0x5   : > { %s796_s17 = sshll.u32 (!%p165_p2), %s791_s16, 3  ;;  %vm221_vm0 = vcmask (!%p165_p2), 64512  }
   0x6   : > { %168 = sbr.rel (%p165_p2) target bundleno = 582 (0x246), region = 36  ;;  %p192_p3 = scmp.lt.s32.totalorder (!%p165_p2), %s796_s17, 15 }
   0xd   : > { %s1237_s17 = smov (!%p192_p3, %s796_s17), 15 }
   0xe   : > { %s832_s18 = sshll.u32 %s1237_s17, 4  ;;  %s800_s8 = sshll.u32 %s1237_s17, 3 }
   0xf   : > { %s958_s21 = scalar_lea.vmem %s1231_s0, %s832_s18  ;;  %s1210_s11 = scalar_lea.vmem %s1235_s4, %s800_s8 }
  0x10   : > { %v205_v0 = vld [vmem:[%s958_s21 + $0x10] sm:$0xff]  ;;  %v204_v1 = vld [vmem:[%s958_s21] sm:$0xff]  ;;  %v802_v2 = vld [vmem:[%s958_s21 + $0x18] sm:$0xff] }
  0x11   : > { %v225_v3 = vsel %vm221_vm0, %v205_v0, 0.0  ;;  %v222_v4 = vsel %vm221_vm0, %v204_v1, 0.0  ;;  %v801_v5 = vld [vmem:[%s958_s21 + $0x8] sm:$0xff]  ;;  %v249_v6 = vsel %vm221_vm0, %v802_v2, 0.0  ;;  %v206_v9 = vld [vmem:[%s958_s21 + $0x20] sm:$0xff]  ;;  %v976_v12 = vld [vmem:[%s958_s21 + $0x38] sm:$0xff] }
  0x12   : > { %226 = vadd.xlane.f32.xlu1 %v225_v3  ;;  %223 = vadd.xlane.f32.xlu0 %v222_v4  ;;  %v246_v7 = vsel %vm221_vm0, %v801_v5, 0.0  ;;  %v969_v8 = vld [vmem:[%s958_s21 + $0x28] sm:$0xff]  ;;  %v228_v11 = vsel %vm221_vm0, %v206_v9, 0.0  ;;  %v979_v13 = vld [vmem:[%s958_s21 + $0x30] sm:$0xff]  ;;  %v255_v14 = vsel %vm221_vm0, %v976_v12, 0.0  ;;  %v989_v17 = vld [vmem:[%s958_s21 + $0x40] sm:$0xff] }
  0x13   : > { %v252_v10 = vsel %vm221_vm0, %v969_v8, 0.0  ;;  %v231_v15 = vsel %vm221_vm0, %v979_v13, 0.0  ;;  %v986_v16 = vld [vmem:[%s958_s21 + $0x48] sm:$0xff]  ;;  %v234_v19 = vsel %vm221_vm0, %v989_v17, 0.0  ;;  %v996_v20 = vld [vmem:[%s958_s21 + $0x58] sm:$0xff]  ;;  %v999_v21 = vld [vmem:[%s958_s21 + $0x50] sm:$0xff] }
  0x14   : > { %v258_v18 = vsel %vm221_vm0, %v986_v16, 0.0  ;;  %v261_v22 = vsel %vm221_vm0, %v996_v20, 0.0  ;;  %v237_v23 = vsel %vm221_vm0, %v999_v21, 0.0  ;;  %v1006_v24 = vld [vmem:[%s958_s21 + $0x68] sm:$0xff]  ;;  %v1009_v25 = vld [vmem:[%s958_s21 + $0x60] sm:$0xff]  ;;  %v1016_v28 = vld [vmem:[%s958_s21 + $0x78] sm:$0xff] }
  0x15   : > { %v264_v26 = vsel %vm221_vm0, %v1006_v24, 0.0  ;;  %v240_v27 = vsel %vm221_vm0, %v1009_v25, 0.0  ;;  %v1019_v29 = vld [vmem:[%s958_s21 + $0x70] sm:$0xff]  ;;  %v267_v30 = vsel %vm221_vm0, %v1016_v28, 0.0 }
  0x16   : > { %250 = vadd.xlane.f32.xlu1 %v249_v6  ;;  %247 = vadd.xlane.f32.xlu0 %v246_v7  ;;  %v243_v31 = vsel %vm221_vm0, %v1019_v29, 0.0 }
  0x1a   : > { %253 = vadd.xlane.f32.xlu1 %v252_v10  ;;  %229 = vadd.xlane.f32.xlu0 %v228_v11 }
  0x1e   : > { %256 = vadd.xlane.f32.xlu1 %v255_v14  ;;  %232 = vadd.xlane.f32.xlu0 %v231_v15 }
  0x22   : > { %259 = vadd.xlane.f32.xlu1 %v258_v18  ;;  %235 = vadd.xlane.f32.xlu0 %v234_v19 }
  0x26   : > { %262 = vadd.xlane.f32.xlu1 %v261_v22  ;;  %238 = vadd.xlane.f32.xlu0 %v237_v23 }
  0x2a   : > { %265 = vadd.xlane.f32.xlu1 %v264_v26  ;;  %241 = vadd.xlane.f32.xlu0 %v240_v27 }
  0x2e   : > { %268 = vadd.xlane.f32.xlu1 %v267_v30  ;;  %244 = vadd.xlane.f32.xlu0 %v243_v31 }
  0x9f   : > { %v227_v32 = vpop.xlane.xlu1 %226  ;;  %v224_v33 = vpop.xlane.xlu0 %223 }
  0xa3   : > { %v251_v34 = vpop.xlane.xlu1 %250  ;;  %v248_v35 = vpop.xlane.xlu0 %247 }
  0xa4   : > { %v271_v36 = vadd.f32 %v251_v34, %v227_v32  ;;  %v270_v37 = vadd.f32 %v248_v35, %v224_v33 }
  0xa6   : > { %v279_v38 = vmul.f32 0.0625, %v271_v36  ;;  %v278_v39 = vmul.f32 0.0625, %v270_v37 }
  0xa7   : > { %v254_v40 = vpop.xlane.xlu1 %253  ;;  %v230_v41 = vpop.xlane.xlu0 %229 }
  0xa8   : > { %v1025_v42 = vsub.f32 %v205_v0, %v279_v38  ;;  %v1027_v43 = vsub.f32 %v802_v2, %v279_v38  ;;  %v1029_v44 = vsub.f32 %v204_v1, %v278_v39  ;;  %v1031_v45 = vsub.f32 %v801_v5, %v278_v39 }
  0xa9   : > { %v272_v46 = vadd.f32 %v254_v40, %v230_v41 }
  0xaa   : > { %v334_v47 = vmul.f32 %v1031_v45, %v1031_v45  ;;  %v302_v48 = vmul.f32 %v1029_v44, %v1029_v44  ;;  %v335_v52 = vmul.f32 %v1027_v43, %v1027_v43  ;;  %v303_v56 = vmul.f32 %v1025_v42, %v1025_v42 }
  0xab   : > { %v280_v49 = vmul.f32 0.0625, %v272_v46  ;;  %v257_v50 = vpop.xlane.xlu1 %256  ;;  %v233_v51 = vpop.xlane.xlu0 %232 }
  0xac   : > { %v342_v53 = vsel %vm221_vm0, %v334_v47, 0.0  ;;  %v310_v54 = vsel %vm221_vm0, %v302_v48, 0.0  ;;  %v273_v55 = vadd.f32 %v257_v50, %v233_v51  ;;  %v345_v60 = vsel %vm221_vm0, %v335_v52, 0.0 }
  0xad   : > { %v1043_v57 = vsub.f32 %v206_v9, %v280_v49  ;;  %v1046_v58 = vsub.f32 %v969_v8, %v280_v49  ;;  %343 = vadd.xlane.f32.xlu1 %v342_v53  ;;  %311 = vadd.xlane.f32.xlu0 %v310_v54  ;;  %v313_v3 = vsel %vm221_vm0, %v303_v56, 0.0  ;;  %v466_v53 = vld [vmem:[%s1232_s1] sm:$0xff] }
  0xae   : > { %v281_v59 = vmul.f32 0.0625, %v273_v55  ;;  %865 = vmatprep.subr.mxu0 %v466_v53 }
  0xaf   : > { %v260_v61 = vpop.xlane.xlu1 %259  ;;  %v236_v62 = vpop.xlane.xlu0 %235  ;;  %v336_v63 = vmul.f32 %v1046_v58, %v1046_v58  ;;  %v304_v0 = vmul.f32 %v1043_v57, %v1043_v57  ;;  %866 = vmatpush3.msra.mxu0 %v466_v53 }
  0xb0   : > { %v1054_v1 = vsub.f32 %v979_v13, %v281_v59  ;;  %v1057_v2 = vsub.f32 %v976_v12, %v281_v59  ;;  %v274_v4 = vadd.f32 %v260_v61, %v236_v62 }
  0xb1   : > { %346 = vadd.xlane.f32.xlu1 %v345_v60  ;;  %314 = vadd.xlane.f32.xlu0 %v313_v3  ;;  %v348_v5 = vsel %vm221_vm0, %v336_v63, 0.0  ;;  %v316_v7 = vsel %vm221_vm0, %v304_v0, 0.0 }
  0xb2   : > { %v282_v6 = vmul.f32 0.0625, %v274_v4  ;;  %v337_v8 = vmul.f32 %v1057_v2, %v1057_v2  ;;  %v305_v9 = vmul.f32 %v1054_v1, %v1054_v1 }
  0xb3   : > { %v263_v10 = vpop.xlane.xlu1 %262  ;;  %v239_v11 = vpop.xlane.xlu0 %238 }
  0xb4   : > { %v1067_v12 = vsub.f32 %v989_v17, %v282_v6  ;;  %v1070_v13 = vsub.f32 %v986_v16, %v282_v6  ;;  %v275_v14 = vadd.f32 %v263_v10, %v239_v11  ;;  %v351_v15 = vsel %vm221_vm0, %v337_v8, 0.0 }
  0xb5   : > { %349 = vadd.xlane.f32.xlu1 %v348_v5  ;;  %317 = vadd.xlane.f32.xlu0 %v316_v7  ;;  %v319_v19 = vsel %vm221_vm0, %v305_v9, 0.0 }
  0xb6   : > { %v283_v18 = vmul.f32 0.0625, %v275_v14  ;;  %v338_v22 = vmul.f32 %v1070_v13, %v1070_v13  ;;  %v306_v23 = vmul.f32 %v1067_v12, %v1067_v12 }
  0xb7   : > { %v266_v26 = vpop.xlane.xlu1 %265  ;;  %v242_v17 = vpop.xlane.xlu0 %241 }
  0xb8   : > { %v1079_v27 = vsub.f32 %v999_v21, %v283_v18  ;;  %v1082_v16 = vsub.f32 %v996_v20, %v283_v18  ;;  %v276_v30 = vadd.f32 %v266_v26, %v242_v17  ;;  %v354_v31 = vsel %vm221_vm0, %v338_v22, 0.0  ;;  %v1125_v26 = vld [vmem:[%s1233_s2 + $0x1] ss:$0 sm:$0xff]  ;;  %v1130_v17 = vld [vmem:[%s1233_s2] ss:$0 sm:$0xff] }
  0xb9   : > { %352 = vadd.xlane.f32.xlu1 %v351_v15  ;;  %320 = vadd.xlane.f32.xlu0 %v319_v19  ;;  %v322_v33 = vsel %vm221_vm0, %v306_v23, 0.0 }
  0xba   : > { %v284_v32 = vmul.f32 0.0625, %v276_v30  ;;  %v339_v34 = vmul.f32 %v1082_v16, %v1082_v16  ;;  %v307_v35 = vmul.f32 %v1079_v27, %v1079_v27 }
  0xbb   : > { %v269_v36 = vpop.xlane.xlu1 %268  ;;  %v245_v21 = vpop.xlane.xlu0 %244 }
  0xbc   : > { %v1091_v37 = vsub.f32 %v1009_v25, %v284_v32  ;;  %v1094_v20 = vsub.f32 %v1006_v24, %v284_v32  ;;  %v277_v38 = vadd.f32 %v269_v36, %v245_v21  ;;  %v357_v39 = vsel %vm221_vm0, %v339_v34, 0.0  ;;  %v1142_v34 = vld [vmem:[%s1234_s3] ss:$0 sm:$0xff] }
  0xbd   : > { %355 = vadd.xlane.f32.xlu1 %v354_v31  ;;  %323 = vadd.xlane.f32.xlu0 %v322_v33  ;;  %v325_v41 = vsel %vm221_vm0, %v307_v35, 0.0  ;;  %v1137_v33 = vld [vmem:[%s1234_s3 + $0x1] ss:$0 sm:$0xff] }
  0xbe   : > { %v285_v40 = vmul.f32 0.0625, %v277_v38  ;;  %v340_v46 = vmul.f32 %v1094_v20, %v1094_v20  ;;  %v308_v47 = vmul.f32 %v1091_v37, %v1091_v37 }
  0xc0   : > { %v1103_v25 = vsub.f32 %v1019_v29, %v285_v40  ;;  %v1106_v24 = vsub.f32 %v1016_v28, %v285_v40  ;;  %v360_v48 = vsel %vm221_vm0, %v340_v46, 0.0  ;;  %v328_v49 = vsel %vm221_vm0, %v308_v47, 0.0  ;;  %v813_v28 = vld [vmem:[%s1232_s1 + $0x8] sm:$0xff] }
  0xc1   : > { %358 = vadd.xlane.f32.xlu1 %v357_v39  ;;  %326 = vadd.xlane.f32.xlu0 %v325_v41 }
  0xc2   : > { %v341_v50 = vmul.f32 %v1106_v24, %v1106_v24  ;;  %v309_v51 = vmul.f32 %v1103_v25, %v1103_v25  ;;  %851 = vmatprep.subr.mxu1 %v813_v28 }
  0xc3   : > { %852 = vmatpush3.msra.mxu1 %v813_v28 }
  0xc4   : > { %v363_v29 = vsel %vm221_vm0, %v341_v50, 0.0  ;;  %v331_v52 = vsel %vm221_vm0, %v309_v51, 0.0 }
  0xc5   : > { %361 = vadd.xlane.f32.xlu1 %v360_v48  ;;  %329 = vadd.xlane.f32.xlu0 %v328_v49 }
  0xc9   : > { %364 = vadd.xlane.f32.xlu1 %v363_v29  ;;  %332 = vadd.xlane.f32.xlu0 %v331_v52 }
 0x13a   : > { %v344_v54 = vpop.xlane.xlu1 %343  ;;  %v312_v55 = vpop.xlane.xlu0 %311 }
 0x13b   : > { %v366_v56 = vadd.f32 %v344_v54, %v312_v55 }
 0x13d   : > { %v374_v59 = vmul.f32 0.0625, %v366_v56 }
 0x13e   : > { %v347_v60 = vpop.xlane.xlu1 %346  ;;  %v315_v61 = vpop.xlane.xlu0 %314 }
 0x13f   : > { %v382_v62 = vadd.f32 1e-05, %v374_v59  ;;  %v367_v63 = vadd.f32 %v347_v60, %v315_v61 }
 0x141   : > { %895 = vrsqrt.f32 %v382_v62  ;;  %v375_v0 = vmul.f32 0.0625, %v367_v63 }
 0x142   : > { %v350_v3 = vpop.xlane.xlu1 %349  ;;  %v318_v4 = vpop.xlane.xlu0 %317 }
 0x143   : > { %v383_v5 = vadd.f32 1e-05, %v375_v0  ;;  %v368_v6 = vadd.f32 %v350_v3, %v318_v4 }
 0x145   : > { %897 = vrsqrt.f32 %v383_v5  ;;  %v376_v7 = vmul.f32 0.0625, %v368_v6 }
 0x146   : > { %v353_v8 = vpop.xlane.xlu1 %352  ;;  %v321_v9 = vpop.xlane.xlu0 %320 }
 0x147   : > { %v384_v10 = vadd.f32 1e-05, %v376_v7  ;;  %v369_v11 = vadd.f32 %v353_v8, %v321_v9 }
 0x149   : > { %899 = vrsqrt.f32 %v384_v10  ;;  %v377_v14 = vmul.f32 0.0625, %v369_v11 }
 0x14a   : > { %v356_v15 = vpop.xlane.xlu1 %355  ;;  %v324_v18 = vpop.xlane.xlu0 %323 }
 0x14b   : > { %v896_v19 = vpop.eup %895  ;;  %v385_v22 = vadd.f32 1e-05, %v377_v14  ;;  %v370_v23 = vadd.f32 %v356_v15, %v324_v18 }
 0x14c   : > { %v432_v30 = vmul.f32 %v896_v19, %v1031_v45  ;;  %v398_v31 = vmul.f32 %v896_v19, %v1029_v44 }
 0x14d   : > { %901 = vrsqrt.f32 %v385_v22  ;;  %v378_v32 = vmul.f32 0.0625, %v370_v23 }
 0x14e   : > { %v359_v35 = vpop.xlane.xlu1 %358  ;;  %v327_v36 = vpop.xlane.xlu0 %326  ;;  %v445_v21 = vmul.f32 %v1125_v26, %v432_v30  ;;  %v411_v45 = vmul.f32 %v1130_v17, %v398_v31 }
 0x14f   : > { %v898_v38 = vpop.eup %897  ;;  %v386_v44 = vadd.f32 1e-05, %v378_v32  ;;  %v371_v39 = vadd.f32 %v359_v35, %v327_v36 }
 0x150   : > { %v458_v40 = vadd.f32 %v1137_v33, %v445_v21  ;;  %v424_v41 = vadd.f32 %v1142_v34, %v411_v45  ;;  %v433_v46 = vmul.f32 %v898_v38, %v1027_v43  ;;  %v399_v47 = vmul.f32 %v898_v38, %v1025_v42 }
 0x151   : > { %903 = vrsqrt.f32 %v386_v44  ;;  %v379_v48 = vmul.f32 0.0625, %v371_v39 }
 0x152   : > { %v362_v49 = vpop.xlane.xlu1 %361  ;;  %853 = vmatprep.mubr.msk.f32.mxu1 %vm221_vm0, %v458_v40  ;;  %867 = vmatprep.mubr.msk.f32.mxu0 %vm221_vm0, %v424_v41  ;;  %v330_v50 = vpop.xlane.xlu0 %329  ;;  %v446_v51 = vmul.f32 %v1125_v26, %v433_v46  ;;  %v412_v29 = vmul.f32 %v1130_v17, %v399_v47 }
 0x153   : > { %v900_v52 = vpop.eup %899  ;;  %v387_v28 = vadd.f32 1e-05, %v379_v48  ;;  %v372_v53 = vadd.f32 %v362_v49, %v330_v50 }
 0x154   : > { %v459_v54 = vadd.f32 %v1137_v33, %v446_v51  ;;  %v425_v43 = vadd.f32 %v1142_v34, %v412_v29  ;;  %v434_v42 = vmul.f32 %v900_v52, %v1046_v58  ;;  %v400_v55 = vmul.f32 %v900_v52, %v1043_v57 }
 0x155   : > { %905 = vrsqrt.f32 %v387_v28  ;;  %v380_v56 = vmul.f32 0.0625, %v372_v53 }
 0x156   : > { %v365_v59 = vpop.xlane.xlu1 %364  ;;  %854 = vmatmul.mubr.msk.f32.vlgmr.msra.gmra.mrb[0].mxu1 %vm221_vm0, %v459_v54  ;;  %868 = vmatmul.mubr.msk.f32.vlgmr.msra.gmra.mrb[0].mxu0 %vm221_vm0, %v425_v43  ;;  %v333_v60 = vpop.xlane.xlu0 %332  ;;  %v447_v61 = vmul.f32 %v1125_v26, %v434_v42  ;;  %v413_v62 = vmul.f32 %v1130_v17, %v400_v55 }
 0x157   : > { %v902_v63 = vpop.eup %901  ;;  %v388_v0 = vadd.f32 1e-05, %v380_v56  ;;  %v373_v3 = vadd.f32 %v365_v59, %v333_v60 }
 0x158   : > { %v460_v4 = vadd.f32 %v1137_v33, %v447_v61  ;;  %v426_v58 = vadd.f32 %v1142_v34, %v413_v62  ;;  %v435_v57 = vmul.f32 %v902_v63, %v1057_v2  ;;  %v401_v5 = vmul.f32 %v902_v63, %v1054_v1 }
 0x159   : > { %907 = vrsqrt.f32 %v388_v0  ;;  %v381_v6 = vmul.f32 0.0625, %v373_v3 }
 0x15a   : > { %856 = vmatprep.mubr.msk.f32.mxu1 %vm221_vm0, %v460_v4  ;;  %870 = vmatprep.mubr.msk.f32.mxu0 %vm221_vm0, %v426_v58  ;;  %v448_v7 = vmul.f32 %v1125_v26, %v435_v57  ;;  %v414_v8 = vmul.f32 %v1130_v17, %v401_v5 }
 0x15b   : > { %v904_v9 = vpop.eup %903  ;;  %v389_v10 = vadd.f32 1e-05, %v381_v6 }
 0x15c   : > { %v461_v11 = vadd.f32 %v1137_v33, %v448_v7  ;;  %v427_v14 = vadd.f32 %v1142_v34, %v414_v8  ;;  %v436_v2 = vmul.f32 %v904_v9, %v1070_v13  ;;  %v402_v1 = vmul.f32 %v904_v9, %v1067_v12 }
 0x15d   : > { %909 = vrsqrt.f32 %v389_v10 }
 0x15e   : > { %857 = vmatmul.mubr.msk.f32.gmra.mrb[2].mxu1 %vm221_vm0, %v461_v11  ;;  %871 = vmatmul.mubr.msk.f32.gmra.mrb[2].mxu0 %vm221_vm0, %v427_v14  ;;  %v449_v15 = vmul.f32 %v1125_v26, %v436_v2  ;;  %v415_v18 = vmul.f32 %v1130_v17, %v402_v1 }
 0x15f   : > { %v906_v19 = vpop.eup %905 }
 0x160   : > { %v462_v22 = vadd.f32 %v1137_v33, %v449_v15  ;;  %v428_v23 = vadd.f32 %v1142_v34, %v415_v18  ;;  %v437_v30 = vmul.f32 %v906_v19, %v1082_v16  ;;  %v403_v13 = vmul.f32 %v906_v19, %v1079_v27 }
 0x162   : > { %859 = vmatprep.mubr.msk.f32.mxu1 %vm221_vm0, %v462_v22  ;;  %873 = vmatprep.mubr.msk.f32.mxu0 %vm221_vm0, %v428_v23  ;;  %v450_v12 = vmul.f32 %v1125_v26, %v437_v30  ;;  %v416_v31 = vmul.f32 %v1130_v17, %v403_v13 }
 0x163   : > { %v908_v32 = vpop.eup %907 }
 0x164   : > { %v463_v35 = vadd.f32 %v1137_v33, %v450_v12  ;;  %v429_v36 = vadd.f32 %v1142_v34, %v416_v31  ;;  %v438_v21 = vmul.f32 %v908_v32, %v1094_v20  ;;  %v404_v45 = vmul.f32 %v908_v32, %v1091_v37 }
 0x166   : > { %860 = vmatmul.mubr.msk.f32.gmra.mrb[4].mxu1 %vm221_vm0, %v463_v35  ;;  %874 = vmatmul.mubr.msk.f32.gmra.mrb[4].mxu0 %vm221_vm0, %v429_v36  ;;  %v451_v27 = vmul.f32 %v1125_v26, %v438_v21  ;;  %v417_v16 = vmul.f32 %v1130_v17, %v404_v45 }
 0x167   : > { %v910_v38 = vpop.eup %909 }
 0x168   : > { %v464_v44 = vadd.f32 %v1137_v33, %v451_v27  ;;  %v430_v39 = vadd.f32 %v1142_v34, %v417_v16  ;;  %v439_v40 = vmul.f32 %v910_v38, %v1106_v24  ;;  %v405_v20 = vmul.f32 %v910_v38, %v1103_v25 }
 0x16a   : > { %862 = vmatprep.mubr.msk.f32.mxu1 %vm221_vm0, %v464_v44  ;;  %876 = vmatprep.mubr.msk.f32.mxu0 %vm221_vm0, %v430_v39  ;;  %v452_v37 = vmul.f32 %v1125_v26, %v439_v40  ;;  %v418_v41 = vmul.f32 %v1130_v17, %v405_v20 }
 0x16c   : > { %v465_v46 = vadd.f32 %v1137_v33, %v452_v37  ;;  %v431_v47 = vadd.f32 %v1142_v34, %v418_v41 }
 0x16e   : > { %863 = vmatmul.mubr.msk.f32.gmra.mrb[6].mxu1 %vm221_vm0, %v465_v46  ;;  %877 = vmatmul.mubr.msk.f32.gmra.mrb[6].mxu0 %vm221_vm0, %v431_v47 }
 0x229   : > { %v855_v24 = vpop.f32.mrb[0].mxu1  ;;  %v869_v25 = vpop.f32.mrb[0].mxu0 }
 0x22a   : > { %v694_v26 = vadd.f32 %v869_v25, %v855_v24  ;;  %v559_v17 = vpop.f32.mrb[1].mxu1  ;;  %v688_v33 = vpop.f32.mrb[1].mxu0 }
 0x22b   : > { %v689_v34 = vadd.f32 %v688_v33, %v559_v17 }
 0x22c   : > { %728 = vst.msk [vmem:[%s1210_s11 + $0x8] sm:$0xff] %vm221_vm0, %v694_v26 }
 0x22d   : > { %727 = vst.msk [vmem:[%s1210_s11] sm:$0xff] %vm221_vm0, %v689_v34 }
 0x231   : > { %v858_v48 = vpop.f32.mrb[2].mxu1  ;;  %v872_v49 = vpop.f32.mrb[2].mxu0 }
 0x232   : > { %v704_v50 = vadd.f32 %v872_v49, %v858_v48  ;;  %v569_v51 = vpop.f32.mrb[3].mxu1  ;;  %v698_v29 = vpop.f32.mrb[3].mxu0 }
 0x233   : > { %v699_v52 = vadd.f32 %v698_v29, %v569_v51 }
 0x234   : > { %730 = vst.msk [vmem:[%s1210_s11 + $0x18] sm:$0xff] %vm221_vm0, %v704_v50 }
 0x235   : > { %729 = vst.msk [vmem:[%s1210_s11 + $0x10] sm:$0xff] %vm221_vm0, %v699_v52 }
 0x239   : > { %v861_v28 = vpop.f32.mrb[4].mxu1  ;;  %v875_v53 = vpop.f32.mrb[4].mxu0 }
 0x23a   : > { %v714_v54 = vadd.f32 %v875_v53, %v861_v28  ;;  %v579_v43 = vpop.f32.mrb[5].mxu1  ;;  %v708_v42 = vpop.f32.mrb[5].mxu0 }
 0x23b   : > { %v709_v55 = vadd.f32 %v708_v42, %v579_v43 }
 0x23c   : > { %732 = vst.msk [vmem:[%s1210_s11 + $0x28] sm:$0xff] %vm221_vm0, %v714_v54 }
 0x23d   : > { %731 = vst.msk [vmem:[%s1210_s11 + $0x20] sm:$0xff] %vm221_vm0, %v709_v55 }
 0x241   : > { %v864_v56 = vpop.f32.mrb[6].mxu1  ;;  %v878_v59 = vpop.f32.mrb[6].mxu0 }
 0x242   : > { %v724_v60 = vadd.f32 %v878_v59, %v864_v56  ;;  %v589_v61 = vpop.f32.mrb[7].mxu1  ;;  %v718_v62 = vpop.f32.mrb[7].mxu0 }
 0x243   : > { %v719_v63 = vadd.f32 %v718_v62, %v589_v61 }
 0x244   : > { %734 = vst.msk [vmem:[%s1210_s11 + $0x38] sm:$0xff] %vm221_vm0, %v724_v60 }
 0x245   : > { %733 = vst.msk [vmem:[%s1210_s11 + $0x30] sm:$0xff] %vm221_vm0, %v719_v63 }
 0x246 PF: > { %s14_s15 = sadd.s32 1, %s917_s15  }
 0x247   : > { %p11_p4 = scmp.ge.s32.totalorder %s14_s15, 4  }
 0x249   :  { %13 = sbr.rel (!%p11_p4) target bundleno = 1 (0x1), region = 68 }

</bundles_post_ra>
